<compile_context>
chip_gen: v5e
topology: v5e:2x2
jax: 0.10.0
libtpu: 0.0.40
codegen_flags: <defaults>
</compile_context>

<pallas_src>
import functools

import jax
import jax.numpy as jnp
from jax.experimental import pallas as pl
from jax.experimental.pallas import tpu as pltpu

INPUT_DIM = 6
NUM_CLASSES = 3
H1, H2, H3 = 300, 100, 30

# Padded feature sizes.
P_IN = 8      # 6   -> 8    (K dim of fc1; sublane-aligned, block == full array dim)
P_H1 = 384    # 300 -> 384  (lane dim of fc1 output / K dim of fc2)
P_H2 = 128    # 100 -> 128
P_H3 = 32     # 30  -> 32   (K dim of fc4)
P_OUT = 8     # 3   -> 8    (small lane-padded output; block == full array dim)


def _round_up(n, m):
    return ((n + m - 1) // m) * m


def _cdiv(a, b):
    return -(-a // b)


def mlp_softmax_kernel(x_ref, w1_ref, b1_ref, w2_ref, b2_ref,
                       w3_ref, b3_ref, w4_ref, b4_ref, o_ref):
    # fc1 + ReLU  (bf16 MXU inputs, f32 accumulation, f32 bias/activations)
    h = jnp.dot(x_ref[...], w1_ref[...], preferred_element_type=jnp.float32)
    h = jnp.maximum(h + b1_ref[...], 0.0)
    # fc2 + ReLU
    h = jnp.dot(h.astype(jnp.bfloat16), w2_ref[...],
                preferred_element_type=jnp.float32)
    h = jnp.maximum(h + b2_ref[...], 0.0)
    # dropout(p=0.5): identity in eval mode (inference forward pass).
    # TODO(synk): training-mode dropout (pltpu.prng_random_bits mask) not emitted here.
    # fc3 + ReLU
    h = jnp.dot(h.astype(jnp.bfloat16), w3_ref[...],
                preferred_element_type=jnp.float32)
    h = jnp.maximum(h + b3_ref[...], 0.0)
    # fc4 (padded class columns carry a -1e30 bias -> exp() underflows to 0)
    logits = jnp.dot(h.astype(jnp.bfloat16), w4_ref[...],
                     preferred_element_type=jnp.float32)
    logits = logits + b4_ref[...]
    # softmax over dim=1 (row-local; exact normalization)
    m = jnp.max(logits, axis=-1, keepdims=True)
    e = jnp.exp(logits - m)
    denom = jnp.sum(e, axis=-1, keepdims=True)
    o_ref[...] = (e / denom).astype(o_ref.dtype)


@functools.partial(jax.jit, static_argnames=("tile_m",))
def lrm_forward(x, params, tile_m):
    """x: (batch, INPUT_DIM) f32. Returns (batch, NUM_CLASSES) f32 probabilities."""
    w1, b1, w2, b2, w3, b3, w4, b4 = params
    batch = x.shape[0]

    # Pad only the feature dim (6 -> 8) and cast to bf16 once; no batch-dim fill.
    x_pad = jnp.zeros((batch, P_IN), jnp.bfloat16).at[:, :INPUT_DIM].set(
        x.astype(jnp.bfloat16))

    grid = (pl.cdiv(batch, tile_m),)
    row = lambda i: (i, 0)       # x / out stream over the batch grid
    pinned = lambda i: (0, 0)    # weights & biases stay VMEM-resident across steps

    out_pad = pl.pallas_call(
        mlp_softmax_kernel,
        out_shape=jax.ShapeDtypeStruct((batch, P_OUT), jnp.float32),
        grid=grid,
        in_specs=[
            pl.BlockSpec((tile_m, P_IN), row),
            pl.BlockSpec((P_IN, P_H1), pinned), pl.BlockSpec((1, P_H1), pinned),
            pl.BlockSpec((P_H1, P_H2), pinned), pl.BlockSpec((1, P_H2), pinned),
            pl.BlockSpec((P_H2, P_H3), pinned), pl.BlockSpec((1, P_H3), pinned),
            pl.BlockSpec((P_H3, P_OUT), pinned), pl.BlockSpec((1, P_OUT), pinned),
        ],
        out_specs=pl.BlockSpec((tile_m, P_OUT), row),
        compiler_params=pltpu.CompilerParams(
            dimension_semantics=("parallel",)),  # shard batch tiles across v7x's 2 TCs
    )(x_pad, w1, b1, w2, b2, w3, b3, w4, b4)
    return out_pad[:, :NUM_CLASSES]


def _choose_tile_m(batch):
    """Batch-derived tile: no padded-tail waste, per-generation VMEM cap, >=2 tiles on v7x."""
    kind = ""
    try:
        kind = jax.devices()[0].device_kind.lower()
    except Exception:
        pass
    # v5e scoped-VMEM default is 16 MiB -> cap rows lower; v6e/v7x take 1024 comfortably.
    cap = 512 if "v5" in kind else 1024
    # v7x has 2 TensorCores: give the "parallel" batch axis at least 2 grid steps.
    want_tiles = 2 if ("v7" in kind and batch >= 16) else 1
    n_tiles = max(want_tiles, _cdiv(batch, cap))
    return max(8, _round_up(_cdiv(batch, n_tiles), 8))


def _init_linear(key, fan_in, fan_out, p_in, p_out, pad_bias=0.0):
    """PyTorch-style uniform init; weights stored bf16, biases f32, zero-padded.

    `pad_bias` fills padded output columns of the bias (use -1e30 on the final layer
    so padded classes vanish in softmax without an in-kernel mask)."""
    kw, kb = jax.random.split(key)
    bound = 1.0 / jnp.sqrt(float(fan_in))
    w = jax.random.uniform(kw, (fan_in, fan_out), jnp.float32,
                           -bound, bound).astype(jnp.bfloat16)
    b = jax.random.uniform(kb, (fan_out,), jnp.float32, -bound, bound)
    w_pad = jnp.zeros((p_in, p_out), jnp.bfloat16).at[:fan_in, :fan_out].set(w)
    b_pad = jnp.full((1, p_out), pad_bias, jnp.float32).at[0, :fan_out].set(b)
    return w_pad, b_pad, w, b


def _ref_forward(x, raw):
    """Pure-JAX reference mirroring the kernel arithmetic (bf16 MXU inputs, f32 acc)."""
    (w1, b1), (w2, b2), (w3, b3), (w4, b4) = raw
    h = jnp.dot(x.astype(jnp.bfloat16), w1, preferred_element_type=jnp.float32) + b1
    h = jnp.maximum(h, 0.0)
    h = jnp.dot(h.astype(jnp.bfloat16), w2, preferred_element_type=jnp.float32) + b2
    h = jnp.maximum(h, 0.0)
    h = jnp.dot(h.astype(jnp.bfloat16), w3, preferred_element_type=jnp.float32) + b3
    h = jnp.maximum(h, 0.0)
    logits = jnp.dot(h.astype(jnp.bfloat16), w4, preferred_element_type=jnp.float32) + b4
    return jax.nn.softmax(logits, axis=1)


def main():
    key = jax.random.PRNGKey(0)
    k_x1, k_x2, k_x3, k1, k2, k3, k4 = jax.random.split(key, 7)

    w1p, b1p, w1, b1 = _init_linear(k1, INPUT_DIM, H1, P_IN, P_H1)
    w2p, b2p, w2, b2 = _init_linear(k2, H1, H2, P_H1, P_H2)
    w3p, b3p, w3, b3 = _init_linear(k3, H2, H3, P_H2, P_H3)
    w4p, b4p, w4, b4 = _init_linear(k4, H3, NUM_CLASSES, P_H3, P_OUT, pad_bias=-1e30)
    params = (w1p, b1p, w2p, b2p, w3p, b3p, w4p, b4p)
    raw = ((w1, b1), (w2, b2), (w3, b3), (w4, b4))

    # batch=8: single tile; batch=300: batch-sized tile (no tail waste);
    # batch=1037: multi-step grid with a bounds-masked partial tail block.
    for kx, batch in ((k_x1, 8), (k_x2, 300), (k_x3, 1037)):
        x = jax.random.normal(kx, (batch, INPUT_DIM), jnp.float32)
        tile_m = _choose_tile_m(batch)
        out = jax.block_until_ready(lrm_forward(x, params, tile_m))
        ref = _ref_forward(x, raw)
        assert out.shape == (batch, NUM_CLASSES)
        assert jnp.allclose(out, ref, atol=5e-3, rtol=5e-3), \
            f"batch={batch} max abs diff {float(jnp.max(jnp.abs(out - ref)))}"
        assert jnp.allclose(jnp.sum(out, axis=1), 1.0, atol=1e-4)

    print("KERNEL_OK")


if __name__ == "__main__":
    main()
</pallas_src>

<mosaic_0001>
module attributes {stable_mosaic.version = 11 : i64} {
  func.func @mlp_softmax_kernel(%arg0: i32, %arg1: memref<8x8xbf16, #tpu.memory_space<vmem>>, %arg2: memref<8x384xbf16, #tpu.memory_space<vmem>>, %arg3: memref<1x384xf32, #tpu.memory_space<vmem>>, %arg4: memref<384x128xbf16, #tpu.memory_space<vmem>>, %arg5: memref<1x128xf32, #tpu.memory_space<vmem>>, %arg6: memref<128x32xbf16, #tpu.memory_space<vmem>>, %arg7: memref<1x32xf32, #tpu.memory_space<vmem>>, %arg8: memref<32x8xbf16, #tpu.memory_space<vmem>>, %arg9: memref<1x8xf32, #tpu.memory_space<vmem>>, %arg10: memref<8x8xf32, #tpu.memory_space<vmem>>) attributes {dimension_semantics = [#tpu.dimension_semantics<parallel>], iteration_bounds = array<i64: 1>, scalar_prefetch = 0 : i64, scratch_operands = 0 : i64, tpu.core_type = #tpu.core_type<tc>, window_params = [{transform_indices = @transform_0, window_bounds = array<i64: 8, 8>}, {pipeline_mode = #tpu.pipeline_mode<synchronous>, transform_indices = @transform_1, window_bounds = array<i64: 8, 384>}, {pipeline_mode = #tpu.pipeline_mode<synchronous>, transform_indices = @transform_2, window_bounds = array<i64: 1, 384>}, {pipeline_mode = #tpu.pipeline_mode<synchronous>, transform_indices = @transform_3, window_bounds = array<i64: 384, 128>}, {pipeline_mode = #tpu.pipeline_mode<synchronous>, transform_indices = @transform_4, window_bounds = array<i64: 1, 128>}, {pipeline_mode = #tpu.pipeline_mode<synchronous>, transform_indices = @transform_5, window_bounds = array<i64: 128, 32>}, {pipeline_mode = #tpu.pipeline_mode<synchronous>, transform_indices = @transform_6, window_bounds = array<i64: 1, 32>}, {pipeline_mode = #tpu.pipeline_mode<synchronous>, transform_indices = @transform_7, window_bounds = array<i64: 32, 8>}, {pipeline_mode = #tpu.pipeline_mode<synchronous>, transform_indices = @transform_8, window_bounds = array<i64: 1, 8>}, {transform_indices = @transform_9, window_bounds = array<i64: 8, 8>}]} {
    %c0 = arith.constant 0 : index
    %c0_0 = arith.constant 0 : index
    %0 = vector.load %arg1[%c0, %c0_0] : memref<8x8xbf16, #tpu.memory_space<vmem>>, vector<8x8xbf16>
    %c0_1 = arith.constant 0 : index
    %c0_2 = arith.constant 0 : index
    %1 = vector.load %arg2[%c0_1, %c0_2] : memref<8x384xbf16, #tpu.memory_space<vmem>>, vector<8x384xbf16>
    %cst = arith.constant dense<0.000000e+00> : vector<8x384xf32>
    %2 = tpu.matmul %0, %1, %cst {dimension_numbers = #tpu.dot_dimension_numbers<[1], [0], [0], [1], [0, 0, 1, 1], [], []>} : vector<8x8xbf16>, vector<8x384xbf16>, vector<8x384xf32> -> vector<8x384xf32>
    %c0_3 = arith.constant 0 : index
    %c0_4 = arith.constant 0 : index
    %3 = vector.load %arg3[%c0_3, %c0_4] : memref<1x384xf32, #tpu.memory_space<vmem>>, vector<1x384xf32>
    %4 = vector.broadcast %3 : vector<1x384xf32> to vector<8x384xf32>
    %5 = arith.addf %2, %4 : vector<8x384xf32>
    %cst_5 = arith.constant 0.000000e+00 : f32
    %6 = vector.broadcast %cst_5 : f32 to vector<8x384xf32>
    %7 = arith.maximumf %5, %6 : vector<8x384xf32>
    %8 = arith.truncf %7 : vector<8x384xf32> to vector<8x384xbf16>
    %c0_6 = arith.constant 0 : index
    %c0_7 = arith.constant 0 : index
    %9 = vector.load %arg4[%c0_6, %c0_7] : memref<384x128xbf16, #tpu.memory_space<vmem>>, vector<384x128xbf16>
    %cst_8 = arith.constant dense<0.000000e+00> : vector<8x128xf32>
    %10 = tpu.matmul %8, %9, %cst_8 {dimension_numbers = #tpu.dot_dimension_numbers<[1], [0], [0], [1], [0, 0, 1, 1], [], []>} : vector<8x384xbf16>, vector<384x128xbf16>, vector<8x128xf32> -> vector<8x128xf32>
    %c0_9 = arith.constant 0 : index
    %c0_10 = arith.constant 0 : index
    %11 = vector.load %arg5[%c0_9, %c0_10] : memref<1x128xf32, #tpu.memory_space<vmem>>, vector<1x128xf32>
    %12 = vector.broadcast %11 : vector<1x128xf32> to vector<8x128xf32>
    %13 = arith.addf %10, %12 : vector<8x128xf32>
    %cst_11 = arith.constant 0.000000e+00 : f32
    %14 = vector.broadcast %cst_11 : f32 to vector<8x128xf32>
    %15 = arith.maximumf %13, %14 : vector<8x128xf32>
    %16 = arith.truncf %15 : vector<8x128xf32> to vector<8x128xbf16>
    %c0_12 = arith.constant 0 : index
    %c0_13 = arith.constant 0 : index
    %17 = vector.load %arg6[%c0_12, %c0_13] : memref<128x32xbf16, #tpu.memory_space<vmem>>, vector<128x32xbf16>
    %cst_14 = arith.constant dense<0.000000e+00> : vector<8x32xf32>
    %18 = tpu.matmul %16, %17, %cst_14 {dimension_numbers = #tpu.dot_dimension_numbers<[1], [0], [0], [1], [0, 0, 1, 1], [], []>} : vector<8x128xbf16>, vector<128x32xbf16>, vector<8x32xf32> -> vector<8x32xf32>
    %c0_15 = arith.constant 0 : index
    %c0_16 = arith.constant 0 : index
    %19 = vector.load %arg7[%c0_15, %c0_16] : memref<1x32xf32, #tpu.memory_space<vmem>>, vector<1x32xf32>
    %20 = vector.broadcast %19 : vector<1x32xf32> to vector<8x32xf32>
    %21 = arith.addf %18, %20 : vector<8x32xf32>
    %cst_17 = arith.constant 0.000000e+00 : f32
    %22 = vector.broadcast %cst_17 : f32 to vector<8x32xf32>
    %23 = arith.maximumf %21, %22 : vector<8x32xf32>
    %24 = arith.truncf %23 : vector<8x32xf32> to vector<8x32xbf16>
    %c0_18 = arith.constant 0 : index
    %c0_19 = arith.constant 0 : index
    %25 = vector.load %arg8[%c0_18, %c0_19] : memref<32x8xbf16, #tpu.memory_space<vmem>>, vector<32x8xbf16>
    %cst_20 = arith.constant dense<0.000000e+00> : vector<8x8xf32>
    %26 = tpu.matmul %24, %25, %cst_20 {dimension_numbers = #tpu.dot_dimension_numbers<[1], [0], [0], [1], [0, 0, 1, 1], [], []>} : vector<8x32xbf16>, vector<32x8xbf16>, vector<8x8xf32> -> vector<8x8xf32>
    %c0_21 = arith.constant 0 : index
    %c0_22 = arith.constant 0 : index
    %27 = vector.load %arg9[%c0_21, %c0_22] : memref<1x8xf32, #tpu.memory_space<vmem>>, vector<1x8xf32>
    %28 = vector.broadcast %27 : vector<1x8xf32> to vector<8x8xf32>
    %29 = arith.addf %26, %28 : vector<8x8xf32>
    %cst_23 = arith.constant dense<0xFF800000> : vector<8xf32>
    %30 = vector.multi_reduction <maximumf>, %29, %cst_23 [1] : vector<8x8xf32> to vector<8xf32>
    %31 = vector.shape_cast %30 : vector<8xf32> to vector<8x1xf32>
    %32 = vector.broadcast %31 : vector<8x1xf32> to vector<8x8xf32>
    %33 = arith.subf %29, %32 : vector<8x8xf32>
    %34 = math.exp %33 : vector<8x8xf32>
    %cst_24 = arith.constant dense<0.000000e+00> : vector<8xf32>
    %35 = vector.multi_reduction <add>, %34, %cst_24 [1] : vector<8x8xf32> to vector<8xf32>
    %36 = vector.shape_cast %35 : vector<8xf32> to vector<8x1xf32>
    %37 = vector.broadcast %36 : vector<8x1xf32> to vector<8x8xf32>
    %38 = arith.divf %34, %37 : vector<8x8xf32>
    %c0_25 = arith.constant 0 : index
    %c0_26 = arith.constant 0 : index
    %39 = vector.load %arg10[%c0_25, %c0_26] : memref<8x8xf32, #tpu.memory_space<vmem>>, vector<8x8xf32>
    tpu.vector_store %arg10[%c0_25, %c0_26], %38 {strides = array<i32>} : memref<8x8xf32, #tpu.memory_space<vmem>>, vector<8x8xf32>,
    return
  }
  func.func @transform_0(%arg0: i32) -> (i32, i32) {
    %c0_i32 = arith.constant 0 : i32
    %c0_i32_0 = arith.constant 0 : i32
    return %arg0, %c0_i32 : i32, i32
  }
  func.func @transform_1(%arg0: i32) -> (i32, i32) {
    %c0_i32 = arith.constant 0 : i32
    %c0_i32_0 = arith.constant 0 : i32
    %c0_i32_1 = arith.constant 0 : i32
    return %c0_i32, %c0_i32_0 : i32, i32
  }
  func.func @transform_2(%arg0: i32) -> (i32, i32) {
    %c0_i32 = arith.constant 0 : i32
    %c0_i32_0 = arith.constant 0 : i32
    %c0_i32_1 = arith.constant 0 : i32
    return %c0_i32, %c0_i32_0 : i32, i32
  }
  func.func @transform_3(%arg0: i32) -> (i32, i32) {
    %c0_i32 = arith.constant 0 : i32
    %c0_i32_0 = arith.constant 0 : i32
    %c0_i32_1 = arith.constant 0 : i32
    return %c0_i32, %c0_i32_0 : i32, i32
  }
  func.func @transform_4(%arg0: i32) -> (i32, i32) {
    %c0_i32 = arith.constant 0 : i32
    %c0_i32_0 = arith.constant 0 : i32
    %c0_i32_1 = arith.constant 0 : i32
    return %c0_i32, %c0_i32_0 : i32, i32
  }
  func.func @transform_5(%arg0: i32) -> (i32, i32) {
    %c0_i32 = arith.constant 0 : i32
    %c0_i32_0 = arith.constant 0 : i32
    %c0_i32_1 = arith.constant 0 : i32
    return %c0_i32, %c0_i32_0 : i32, i32
  }
  func.func @transform_6(%arg0: i32) -> (i32, i32) {
    %c0_i32 = arith.constant 0 : i32
    %c0_i32_0 = arith.constant 0 : i32
    %c0_i32_1 = arith.constant 0 : i32
    return %c0_i32, %c0_i32_0 : i32, i32
  }
  func.func @transform_7(%arg0: i32) -> (i32, i32) {
    %c0_i32 = arith.constant 0 : i32
    %c0_i32_0 = arith.constant 0 : i32
    %c0_i32_1 = arith.constant 0 : i32
    return %c0_i32, %c0_i32_0 : i32, i32
  }
  func.func @transform_8(%arg0: i32) -> (i32, i32) {
    %c0_i32 = arith.constant 0 : i32
    %c0_i32_0 = arith.constant 0 : i32
    %c0_i32_1 = arith.constant 0 : i32
    return %c0_i32, %c0_i32_0 : i32, i32
  }
  func.func @transform_9(%arg0: i32) -> (i32, i32) {
    %c0_i32 = arith.constant 0 : i32
    %c0_i32_0 = arith.constant 0 : i32
    return %arg0, %c0_i32 : i32, i32
  }
}

</mosaic_0001>

<bundles_post_ra>
// kernel: lrm_forward.1
= control target key start
LH: loop header
LB: loop body
LE: loop exit
PB: predicated region body
PF: predicated region fallthrough
CT: control target
= control target key end

     0   :  { %14 = vsyncpa [#allocation3], 0  ;;  %s724_s12 = smov [#allocation2]   ;;  %s725_s14 = smov 64   ;;  %s840_s0 = inlined_call_operand.vmem [shape: bf16[8,8], index: 0, kind: input, shape index: {}]   ;;  %s841_s1 = inlined_call_operand.vmem [shape: bf16[8,384], index: 1, kind: input, shape index: {}]   ;;  %s842_s2 = inlined_call_operand.vmem [shape: f32[1,384], index: 2, kind: input, shape index: {}]   ;;  %s843_s3 = inlined_call_operand.hbm [shape: bf16[384,128], index: 3, kind: input, shape index: {}]   ;;  %s844_s4 = inlined_call_operand.vmem [shape: f32[1,128], index: 4, kind: input, shape index: {}]   ;;  %s845_s5 = inlined_call_operand.vmem [shape: bf16[128,32], index: 5, kind: input, shape index: {}]   ;;  %s846_s6 = inlined_call_operand.vmem [shape: f32[1,32], index: 6, kind: input, shape index: {}]   ;;  %s847_s7 = inlined_call_operand.vmem [shape: bf16[32,8], index: 7, kind: input, shape index: {}]   ;;  %s848_s8 = inlined_call_operand.vmem [shape: f32[1,8], index: 8, kind: input, shape index: {}]   ;;  %s849_s9 = inlined_call_operand.vmem [shape: f32[8,8], index: 9, kind: output, shape index: {}]  }
   0x1   :  { %s25_s11 = sshll.u32 %s843_s3, 4  ;;  %s27_s13 = sshll.u32 %s724_s12, 4  ;;  %s26_s11 = int_to_ptr.hbm [resolvable:$true] %s25_s11  ;;  %s28_s13 = int_to_ptr.vmem [resolvable:$true] %s27_s13 }
   0x2   :  { %s726_s15 = smov 4  }
   0x3   :  { %33 = dma.hbm_to_vmem [thread:$0]  %s26_s11, 3072, %s28_s13, [#allocation3], %s725_s14, %s725_s14, %s726_s15  }
   0x4   :  { %722 = dma.done.wait [#allocation3], 3072  }
   0x5   :  { %723 = vsyncadd [#allocation3], 4294964224  ;;  %v50_v0 = vld [vmem:[%s841_s1] sm:$0xff]  ;;  %v51_v1 = vld [vmem:[%s841_s1 + $0x8] sm:$0xf]  ;;  %vm72_vm0 = vcmask 1043456  }
   0x6   :  { %v62_v2 = vunpack.c.l.b16 %v50_v0  ;;  %v63_v3 = vunpack.c.h.b16 %v50_v0  ;;  %v64_v4 = vunpack.c.l.b16 %v51_v1  ;;  %v661_v5 = vld [vmem:[#allocation2 + $0x38] sm:$0xff]  ;;  %v660_v10 = vld [vmem:[#allocation2 + $0x30] sm:$0xff]  ;;  %v49_v15 = vld [vmem:[%s840_s0] sm:$0xf]  ;;  %vm68_vm1 = vcmask 64512  }
   0x7   :  { %323 = vmatpush.bf16.msra.mxu3 %v661_v5  ;;  %v669_v9 = vld [vmem:[#allocation2 + $0x78] sm:$0xff]  ;;  %v668_v16 = vld [vmem:[#allocation2 + $0x70] sm:$0xff]  ;;  %v659_v17 = vld [vmem:[#allocation2 + $0x28] sm:$0xff]  ;;  %vm467_vm2 = vcmask 261120  }
   0x8   :  { %v65_v6 = vpack.c.b16 %v62_v2, %v62_v2  ;;  %v66_v7 = vpack.c.b16 %v63_v3, %v63_v3  ;;  %v67_v8 = vpack.c.b16 %v64_v4, %v64_v4  ;;  %v677_v11 = vld [vmem:[#allocation2 + $0xb8] sm:$0xff]  ;;  %v676_v18 = vld [vmem:[#allocation2 + $0xb0] sm:$0xff]  ;;  %v667_v19 = vld [vmem:[#allocation2 + $0x68] sm:$0xff] }
   0x9   :  { %v658_v20 = vld [vmem:[#allocation2 + $0x20] sm:$0xff]  ;;  %v675_v21 = vld [vmem:[#allocation2 + $0xa8] sm:$0xff]  ;;  %v657_v23 = vld [vmem:[#allocation2 + $0x18] sm:$0xff] }
   0xa   :  { %v74_v12 = vsel %vm72_vm0, %v65_v6, 0  ;;  %v77_v13 = vsel %vm72_vm0, %v66_v7, 0  ;;  %v80_v14 = vsel %vm72_vm0, %v67_v8, 0  ;;  %v666_v22 = vld [vmem:[#allocation2 + $0x60] sm:$0xff]  ;;  %v665_v25 = vld [vmem:[#allocation2 + $0x58] sm:$0xff]  ;;  %v656_v26 = vld [vmem:[#allocation2 + $0x10] sm:$0xff] }
   0xb   :  { %89 = vmatpush.bf16.msra.mxu0 %v74_v12  ;;  %102 = vmatpush.bf16.msra.mxu1 %v77_v13  ;;  %v674_v24 = vld [vmem:[#allocation2 + $0xa0] sm:$0xff]  ;;  %v673_v27 = vld [vmem:[#allocation2 + $0x98] sm:$0xff]  ;;  %v664_v28 = vld [vmem:[#allocation2 + $0x50] sm:$0xff] }
   0xc   :  { %115 = vmatpush.bf16.msra.mxu2 %v80_v14  ;;  %324 = vmatpush.bf16.msra.mxu3 %v660_v10  ;;  %v655_v29 = vld [vmem:[#allocation2 + $0x8] sm:$0xff]  ;;  %v672_v31 = vld [vmem:[#allocation2 + $0x90] sm:$0xff]  ;;  %v654_v32 = vld [vmem:[#allocation2] sm:$0xff] }
   0xd   :  { %v663_v30 = vld [vmem:[#allocation2 + $0x48] sm:$0xff]  ;;  %v662_v33 = vld [vmem:[#allocation2 + $0x40] sm:$0xff]  ;;  %v685_v36 = vld [vmem:[%s845_s5 + $0x38] sm:$0xff] }
   0xe   :  { %514 = vmatmul.msk.bf16.vlgmr.msra.gmra.mxu0 %vm68_vm1, %v49_v15  ;;  %515 = vmatmul.msk.bf16.vlgmr.msra.gmra.mxu1 %vm68_vm1, %v49_v15  ;;  %v671_v34 = vld [vmem:[#allocation2 + $0x88] sm:$0xff]  ;;  %v670_v35 = vld [vmem:[#allocation2 + $0x80] sm:$0xff]  ;;  %v684_v37 = vld [vmem:[%s845_s5 + $0x30] sm:$0xff] }
   0xf   :  { %336 = vmatpush.bf16.msrb.mxu0 %v669_v9  ;;  %349 = vmatpush.bf16.msrb.mxu1 %v677_v11  ;;  %v683_v38 = vld [vmem:[%s845_s5 + $0x28] sm:$0xff]  ;;  %v682_v39 = vld [vmem:[%s845_s5 + $0x20] sm:$0xff]  ;;  %v681_v59 = vld [vmem:[%s845_s5 + $0x18] sm:$0xff] }
  0x10   :  { %516 = vmatmul.msk.bf16.vlgmr.msra.gmra.mxu2 %vm68_vm1, %v49_v15  ;;  %325 = vmatpush.bf16.msra.mxu3 %v659_v17  ;;  %v52_v40 = vld [vmem:[%s842_s2] sm:$0x7]  ;;  %v680_v60 = vld [vmem:[%s845_s5 + $0x10] sm:$0xff]  ;;  %v679_v61 = vld [vmem:[%s845_s5 + $0x8] sm:$0xff] }
  0x11   :  { %432 = vmatpush.bf16.msrb.mxu2 %v685_v36  ;;  %v54_v41 = vperm.slane %v52_v40, 0  ;;  %v55_v42 = vperm.slane %v52_v40, 1  ;;  %v56_v49 = vperm.slane %v52_v40, 2  ;;  %v678_v62 = vld [vmem:[%s845_s5] sm:$0xff]  ;;  %v687_v63 = vld [vmem:[%s847_s7 + $0x8] sm:$0xff] }
  0x12   :  { %v686_v0 = vld [vmem:[%s847_s7] sm:$0xff] }
  0x13   :  { %337 = vmatpush.bf16.msrb.mxu0 %v668_v16  ;;  %350 = vmatpush.bf16.msrb.mxu1 %v676_v18  ;;  %v691_v2 = vld [vmem:[%s844_s4] ss:$0 sm:$0xff] }
  0x14   :  { %326 = vmatpush.bf16.msra.mxu3 %v658_v20  ;;  %v692_v13 = vld [vmem:[%s846_s6] ss:$0 sm:$0xff] }
  0x15   :  { %433 = vmatpush.bf16.msrb.mxu2 %v684_v37 }
  0x17   :  { %338 = vmatpush.bf16.msrb.mxu0 %v667_v19  ;;  %351 = vmatpush.bf16.msrb.mxu1 %v675_v21  ;;  %v693_v19 = vld [vmem:[%s848_s8] ss:$0 sm:$0xff] }
  0x18   :  { %327 = vmatpush.bf16.msra.mxu3 %v657_v23 }
  0x19   :  { %434 = vmatpush.bf16.msrb.mxu2 %v683_v38 }
  0x1b   :  { %339 = vmatpush.bf16.msrb.mxu0 %v666_v22  ;;  %352 = vmatpush.bf16.msrb.mxu1 %v674_v24 }
  0x1c   :  { %328 = vmatpush.bf16.msra.mxu3 %v656_v26 }
  0x1d   :  { %435 = vmatpush.bf16.msrb.mxu2 %v682_v39 }
  0x1f   :  { %340 = vmatpush.bf16.msrb.mxu0 %v665_v25  ;;  %353 = vmatpush.bf16.msrb.mxu1 %v673_v27 }
  0x20   :  { %329 = vmatpush.bf16.msra.mxu3 %v655_v29 }
  0x21   :  { %436 = vmatpush.bf16.msrb.mxu2 %v681_v59 }
  0x23   :  { %341 = vmatpush.bf16.msrb.mxu0 %v664_v28  ;;  %354 = vmatpush.bf16.msrb.mxu1 %v672_v31 }
  0x24   :  { %330 = vmatpush.bf16.msra.mxu3 %v654_v32 }
  0x25   :  { %437 = vmatpush.bf16.msrb.mxu2 %v680_v60 }
  0x27   :  { %342 = vmatpush.bf16.msrb.mxu0 %v663_v30  ;;  %355 = vmatpush.bf16.msrb.mxu1 %v671_v34 }
  0x28   :  { %477 = vmatpush.bf16.msrb.mxu3 %v687_v63 }
  0x29   :  { %438 = vmatpush.bf16.msrb.mxu2 %v679_v61 }
  0x2b   :  { %343 = vmatpush.bf16.msrb.mxu0 %v662_v33  ;;  %356 = vmatpush.bf16.msrb.mxu1 %v670_v35 }
  0x2c   :  { %478 = vmatpush.bf16.msrb.mxu3 %v686_v0 }
  0x2d   :  { %439 = vmatpush.bf16.msrb.mxu2 %v678_v62 }
  0x8b   :  { %v91_v43 = vpop.f32.mrf.mxu0  ;;  %v104_v44 = vpop.f32.mrf.mxu1 }
  0x8c   :  { %v92_v45 = vadd.f32 %v91_v43, %v54_v41  ;;  %v105_v46 = vadd.f32 %v104_v44, %v55_v42 }
  0x8e   :  { %v121_v47 = vmax.f32 %v92_v45, 0.0  ;;  %v122_v48 = vmax.f32 %v105_v46, 0.0 }
  0x90   :  { %v125_v50 = vpack.c.bf16 %v122_v48, %v122_v48  ;;  %v124_v51 = vpack.c.bf16 %v121_v47, %v121_v47 }
  0x92   :  { %331 = vmatmul.bf16.vlgmr.msra.gmra.mxu3 %v124_v51  ;;  %344 = vmatmul.bf16.vlgmr.msrb.gmra.mxu0 %v125_v50 }
  0x93   :  { %v117_v52 = vpop.f32.mrf.mxu2  ;;  %v93_v54 = vpop.f32.mrf.mxu0 }
  0x94   :  { %v118_v53 = vadd.f32 %v117_v52, %v56_v49  ;;  %v106_v55 = vpop.f32.mrf.mxu1 }
  0x96   :  { %v123_v56 = vmax.f32 %v118_v53, 0.0 }
  0x98   :  { %v126_v57 = vpack.c.bf16 %v123_v56, %v123_v56 }
  0x9a   :  { %357 = vmatmul.bf16.vlgmr.msrb.gmra.mxu1 %v126_v57 }
  0x9b   :  { %v119_v58 = vpop.f32.mrf.mxu2 }
 0x10f   :  { %v345_v1 = vpop.f32.mrf.mxu0 }
 0x115   :  { %v332_v3 = vpop.f32.mrf.mxu3 }
 0x116   :  { %v333_v4 = vadd.f32 %v691_v2, %v332_v3 }
 0x117   :  { %v358_v5 = vpop.f32.mrf.mxu1  ;;  %v347_v6 = vpop.f32.mrf.mxu0 }
 0x118   :  { %v346_v7 = vadd.f32 %v345_v1, %v333_v4 }
 0x11a   :  { %v359_v8 = vadd.f32 %v358_v5, %v346_v7 }
 0x11c   :  { %v362_v9 = vmax.f32 %v359_v8, 0.0 }
 0x11d   :  { %v334_v10 = vpop.f32.mrf.mxu3 }
 0x11e   :  { %v363_v11 = vpack.c.bf16 %v362_v9, %v362_v9 }
 0x11f   :  { %v360_v12 = vpop.f32.mrf.mxu1 }
 0x120   :  { %440 = vmatmul.bf16.vlgmr.msrb.gmra.mxu2 %v363_v11 }
 0x1a3   :  { %v441_v14 = vpop.f32.mrf.mxu2 }
 0x1a4   :  { %v442_v15 = vadd.f32 %v692_v13, %v441_v14 }
 0x1a6   :  { %v445_v16 = vmax.f32 %v442_v15, 0.0 }
 0x1a8   :  { %v446_v17 = vpack.c.bf16 %v445_v16, %v445_v16 }
 0x1aa   :  { %653 = vmatmul.msk.bf16.vlgmr.msrb.gmra.mxu3 %vm467_vm2, %v446_v17 }
 0x1ab   :  { %v443_v18 = vpop.f32.mrf.mxu2 }
 0x22d   :  { %v480_v20 = vpop.f32.mrf.mxu3 }
 0x22e   :  { %v481_v21 = vadd.f32 %v693_v19, %v480_v20 }
 0x230   :  { %v484_v22 = vsel %vm68_vm1, %v481_v21, -inf }
 0x231   :  { %485 = vmax.xlane.f32.xlu0 %v484_v22 }
 0x235   :  { %v482_v23 = vpop.f32.mrf.mxu3 }
 0x2a4   :  { %v486_v24 = vpop.xlane.xlu0 %485 }
 0x2a5   :  { %v487_v25 = vsub.f32 %v481_v21, %v486_v24 }
 0x2a7   :  { %v488_v26 = vmul.f32 1.442695, %v487_v25 }
 0x2a9   :  { %694 = vpow2.f32 %v488_v26 }
 0x2af   :  { %v695_v27 = vpop.eup %694 }
 0x2b0   :  { %v490_v28 = vsel %vm68_vm1, %v695_v27, 0.0 }
 0x2b1   :  { %491 = vadd.xlane.f32.xlu0 %v490_v28 }
 0x324   :  { %v492_v29 = vpop.xlane.xlu0 %491 }
 0x325   :  { %696 = vrcp.f32 %v492_v29  ;;  %v504_v33 = vand.u32 2147483648, %v492_v29  ;;  %v502_v35 = vand.u32 2147483647, %v492_v29  ;;  %vm498_vm4 = vweird.f32 %v492_v29 }
 0x327   :  { %v505_v37 = vor.u32 1.1754944e-38, %v504_v33  ;;  %vm503_vm6 = vcmp.eq.f32.partialorder %v502_v35, 8.507059e+37 }
 0x32b   :  { %v697_v30 = vpop.eup %696 }
 0x32c   :  { %v494_v31 = vmul.f32 %v697_v30, %v492_v29  ;;  %vm499_vm3 = vweird.f32 %v697_v30 }
 0x32d   :  { %vm500_vm5 = vmor %vm498_vm4, %vm499_vm3 }
 0x32e   :  { %v495_v32 = vsub.f32 1.0, %v494_v31 }
 0x330   :  { %v496_v34 = vmul.f32 %v697_v30, %v495_v32 }
 0x332   :  { %v497_v36 = vadd.f32 %v697_v30, %v496_v34 }
 0x334   :  { %v501_v38 = vsel %vm500_vm5, %v697_v30, %v497_v36 }
 0x335   :  { %v506_v39 = vsel %vm503_vm6, %v505_v37, %v501_v38 }
 0x336   :  { %v507_v40 = vmul.f32 %v695_v27, %v506_v39 }
 0x338   :  { %508 = vst.msk [vmem:[%s849_s9] sm:$0xff] %vm68_vm1, %v507_v40 }
 0x339   :  { %513 = vsyncpa [#allocation3], 1 }

</bundles_post_ra>
